<compile_context>
chip_gen: v5e
topology: v5e:2x2
jax: 0.10.0
libtpu: 0.0.40
codegen_flags: <defaults>
</compile_context>

<pallas_src>
import math

import jax
import jax.numpy as jnp
from jax.experimental import pallas as pl
from jax.experimental.pallas import tpu as pltpu


def _round_up(a: int, b: int) -> int:
    return ((a + b - 1) // b) * b


def _pick_group(hidden_dim: int, max_group: int = 8) -> int:
    """Packing factor G with hidden_dim*G % 128 == 0 (lane-dense output).

    Never falls back to G=1: for hidden_dim like 24 or 40 the minimal G
    exceeds max_group, and we keep it anyway rather than reintroducing the
    masked-store (lane-sparse) penalty the packing exists to avoid.
    """
    g_min = 128 // math.gcd(hidden_dim, 128)
    if g_min >= max_group:
        return g_min
    return (max_group // g_min) * g_min


def _proj_kernel_rgb(rgb_ref, xyz_ref, wr_ref, wx_ref, b_ref, o_ref):
    # Two small MXU pushes instead of a lane-axis concat + one dot.
    acc = jnp.dot(rgb_ref[...], wr_ref[...], preferred_element_type=jnp.float32)
    acc = acc + jnp.dot(xyz_ref[...], wx_ref[...], preferred_element_type=jnp.float32)
    o_ref[...] = (acc + b_ref[...]).astype(o_ref.dtype)


def _proj_kernel_xyz(xyz_ref, wx_ref, b_ref, o_ref):
    acc = jnp.dot(xyz_ref[...], wx_ref[...], preferred_element_type=jnp.float32)
    o_ref[...] = (acc + b_ref[...]).astype(o_ref.dtype)


def point_cloud_encoder_forward(
    input_xyz_pts: jax.Array,    # (..., num_pts, 3)
    input_rgb_pts: jax.Array,    # (..., num_pts, point_feature_dim) if use_rgb
    weight: jax.Array,           # (hidden_dim, point_feature_dim + 3)  torch Linear layout
    bias: jax.Array,             # (hidden_dim,)
    *,
    use_rgb: bool,
    max_points_per_tile: int = 32768,   # points per grid step (see VMEM cap below)
    max_group: int = 8,                 # 8 is safe everywhere; 16 helps v6e/v7x
    min_pts_for_pallas: int = 16384,    # tiny clouds: fused XLA path is faster
):
    hidden_dim, in_dim = weight.shape
    lead_shape = input_xyz_pts.shape[:-1]
    n_rows = math.prod(lead_shape) if lead_shape else 1
    out_dtype = input_xyz_pts.dtype

    # ---- weight slices / ones-folded-into-bias -------------------------------
    if use_rgb:
        pf = input_rgb_pts.shape[-1]
        assert pf + 3 == in_dim
        w_rgb_s = weight[:, :pf].T          # (pf, hidden)
        w_xyz_s = weight[:, pf:].T          # (3, hidden)
        bias_eff = bias
    else:
        # torch: cat([ones[..., :1], xyz]).  ones @ W[:, :1].T == W[:, 0],
        # so fold it into the bias and drop the rgb input stream entirely.
        assert in_dim == 4
        pf = 0
        w_rgb_s = None
        w_xyz_s = weight[:, 1:].T           # (3, hidden)
        bias_eff = bias + weight[:, 0]

    # ---- tiny inputs: plain XLA (pallas_call launch cost dominates) ---------
    if n_rows < min_pts_for_pallas:
        out = jnp.dot(input_xyz_pts, w_xyz_s)
        if use_rgb:
            out = out + jnp.dot(input_rgb_pts, w_rgb_s)
        return (out + bias_eff).astype(out_dtype)

    xyz = input_xyz_pts.reshape(n_rows, 3)
    rgb = input_rgb_pts.reshape(n_rows, pf) if use_rgb else None

    # ---- lane-dense output packing -------------------------------------------
    G = _pick_group(hidden_dim, max_group)      # hidden=32, max_group=8 -> G=8
    out_lanes = hidden_dim * G                  # multiple of 128

    itemsize = jnp.dtype(input_xyz_pts.dtype).itemsize
    out_itemsize = jnp.dtype(out_dtype).itemsize
    sub = 8 if itemsize >= 4 else 16            # sublane tile for the row axis

    # Pad rows only to G*sub (<= 127 points), not to a tile multiple.
    row_align = G * sub
    n_rows_pad = _round_up(n_rows, row_align)
    if n_rows_pad != n_rows:
        pad = n_rows_pad - n_rows
        xyz = jnp.pad(xyz, ((0, pad), (0, 0)))
        if rgb is not None:
            rgb = jnp.pad(rgb, ((0, pad), (0, 0)))
    n_big = n_rows_pad // G                     # multiple of `sub`

    # ---- tile selection -------------------------------------------------------
    # Real VMEM per big row: the narrow (12-48 lane) input tiles pad to 128
    # lanes in VMEM; everything is double-buffered by the BlockSpec pipeline.
    in_bytes_row = _round_up(3 * G, 128) * itemsize
    if use_rgb:
        in_bytes_row += _round_up(pf * G, 128) * itemsize
    out_bytes_row = out_lanes * out_itemsize
    per_big_row = 2 * (in_bytes_row + out_bytes_row)        # double-buffered
    vmem_tile_budget = 24 * 1024 * 1024                     # fits v7x's 64 MiB/TC too

    tile_big = min(max(1, max_points_per_tile // G), vmem_tile_budget // per_big_row)
    # Keep >= 2 grid steps so ("parallel",) can shard across v7x's TensorCores.
    tile_big = min(tile_big, _round_up(pl.cdiv(n_big, 2), sub))
    tile_big = max(sub, (tile_big // sub) * sub)
    grid = (pl.cdiv(n_big, tile_big),)          # ragged final block is masked

    # Row-major regroup of G points per big row: bit-identical layout, free.
    xyz_big = xyz.reshape(n_big, 3 * G)
    eye_g = jnp.eye(G, dtype=weight.dtype)
    w_xyz_big = jnp.kron(eye_g, w_xyz_s)                    # (3G, hidden*G) block-diag
    bias_big = jnp.tile(bias_eff, G).reshape(1, out_lanes)  # (1, hidden*G)

    # Advisory cost estimate: memory-bound custom call, negligible flops.
    bytes_accessed = (
        n_rows_pad * 3 * itemsize
        + (n_rows_pad * pf * itemsize if use_rgb else 0)
        + n_rows_pad * hidden_dim * out_itemsize
        + (3 * G + (pf * G if use_rgb else 0) + 1) * out_lanes
        * jnp.dtype(weight.dtype).itemsize
    )
    flops = 2 * n_big * out_lanes * (3 * G + (pf * G if use_rgb else 0))
    cost = pl.CostEstimate(flops=flops, transcendentals=0,
                           bytes_accessed=bytes_accessed)

    cparams = pltpu.CompilerParams(
        dimension_semantics=("parallel",),       # megacore sharding on v7x
        vmem_limit_bytes=32 * 1024 * 1024,       # v5e scoped default is only 16 MiB
    )

    if use_rgb:
        rgb_big = rgb.reshape(n_big, pf * G)
        w_rgb_big = jnp.kron(eye_g, w_rgb_s)                # (pf*G, hidden*G)
        out_big = pl.pallas_call(
            _proj_kernel_rgb,
            out_shape=jax.ShapeDtypeStruct((n_big, out_lanes), out_dtype),
            grid_spec=pltpu.PrefetchScalarGridSpec(
                num_scalar_prefetch=0,
                grid=grid,
                in_specs=[
                    pl.BlockSpec((tile_big, pf * G), lambda i: (i, 0)),
                    pl.BlockSpec((tile_big, 3 * G), lambda i: (i, 0)),
                    # Weights / bias are resident across the whole grid
                    # (block index never changes -> no re-DMA).
                    pl.BlockSpec((pf * G, out_lanes), lambda i: (0, 0)),
                    pl.BlockSpec((3 * G, out_lanes), lambda i: (0, 0)),
                    pl.BlockSpec((1, out_lanes), lambda i: (0, 0)),
                ],
                out_specs=pl.BlockSpec((tile_big, out_lanes), lambda i: (i, 0)),
            ),
            compiler_params=cparams,
            cost_estimate=cost,
        )(rgb_big, xyz_big, w_rgb_big, w_xyz_big, bias_big)
    else:
        out_big = pl.pallas_call(
            _proj_kernel_xyz,
            out_shape=jax.ShapeDtypeStruct((n_big, out_lanes), out_dtype),
            grid_spec=pltpu.PrefetchScalarGridSpec(
                num_scalar_prefetch=0,
                grid=grid,
                in_specs=[
                    pl.BlockSpec((tile_big, 3 * G), lambda i: (i, 0)),
                    pl.BlockSpec((3 * G, out_lanes), lambda i: (0, 0)),
                    pl.BlockSpec((1, out_lanes), lambda i: (0, 0)),
                ],
                out_specs=pl.BlockSpec((tile_big, out_lanes), lambda i: (i, 0)),
            ),
            compiler_params=cparams,
            cost_estimate=cost,
        )(xyz_big, w_xyz_big, bias_big)

    # Ungroup (free row-major reshape); drop the <= G*sub padded rows.
    out = out_big.reshape(n_rows_pad, hidden_dim)
    if n_rows_pad != n_rows:
        out = out[:n_rows]
    return out.reshape(*lead_shape, hidden_dim)


def init_params(key, point_feature_dim: int, hidden_dim: int):
    # Synthetic init mirroring torch.nn.Linear(point_feature_dim+3, hidden_dim).
    in_dim = point_feature_dim + 3
    k_w, k_b = jax.random.split(key)
    bound = 1.0 / jnp.sqrt(in_dim)
    weight = jax.random.uniform(k_w, (hidden_dim, in_dim), jnp.float32, -bound, bound)
    bias = jax.random.uniform(k_b, (hidden_dim,), jnp.float32, -bound, bound)
    return weight, bias


if __name__ == "__main__":
    key = jax.random.PRNGKey(0)
    k1, k2, k3, k4, k5 = jax.random.split(key, 5)

    hidden_dim = 32
    batch, horizon = 2, 2

    # ---- Config 1: use_rgb=True, pf=3; exercises the ragged final grid block.
    num_obs_pts = 80      # 320 rows -> 40 big rows, tile 24 -> grid 2 (ragged tail)
    xyz = jax.random.normal(k1, (batch, horizon, num_obs_pts, 3), jnp.float32)
    rgb = jax.random.uniform(k2, (batch, horizon, num_obs_pts, 3), jnp.float32)
    w, b = init_params(k3, point_feature_dim=3, hidden_dim=hidden_dim)

    out = jax.block_until_ready(
        point_cloud_encoder_forward(xyz, rgb, w, b, use_rgb=True,
                                    min_pts_for_pallas=0))   # force Pallas path
    ref = jnp.concatenate([rgb, xyz], axis=-1) @ w.T + b
    assert out.shape == (batch, horizon, num_obs_pts, hidden_dim)
    assert jnp.allclose(out, ref, atol=1e-5, rtol=1e-5)

    # ---- Config 2: use_rgb=False, pf=1; exercises the pad + output-slice path.
    num_obs_pts2 = 51     # 204 rows -> padded to 256 (G*8 alignment), sliced back
    xyz2 = jax.random.normal(k4, (batch, horizon, num_obs_pts2, 3), jnp.float32)
    rgb2 = jax.random.uniform(k5, (batch, horizon, num_obs_pts2, 3), jnp.float32)
    w2, b2 = init_params(k5, point_feature_dim=1, hidden_dim=hidden_dim)

    out2 = jax.block_until_ready(
        point_cloud_encoder_forward(xyz2, rgb2, w2, b2, use_rgb=False,
                                    min_pts_for_pallas=0))   # force Pallas path
    ones = jnp.ones_like(rgb2)[..., :1]
    ref2 = jnp.concatenate([ones, xyz2], axis=-1) @ w2.T + b2
    assert out2.shape == (batch, horizon, num_obs_pts2, hidden_dim)
    assert jnp.allclose(out2, ref2, atol=1e-5, rtol=1e-5)

    # ---- Config 3: same tiny inputs via the default XLA fallback path.
    out3 = jax.block_until_ready(
        point_cloud_encoder_forward(xyz, rgb, w, b, use_rgb=True))
    assert jnp.allclose(out3, ref, atol=1e-5, rtol=1e-5)

    print("KERNEL_OK")
</pallas_src>

<mosaic_0001>
module attributes {stable_mosaic.version = 11 : i64} {
  func.func @_proj_kernel_rgb(%arg0: i32, %arg1: memref<24x24xf32, #tpu.memory_space<vmem>>, %arg2: memref<24x24xf32, #tpu.memory_space<vmem>>, %arg3: memref<24x256xf32, #tpu.memory_space<vmem>>, %arg4: memref<24x256xf32, #tpu.memory_space<vmem>>, %arg5: memref<1x256xf32, #tpu.memory_space<vmem>>, %arg6: memref<24x256xf32, #tpu.memory_space<vmem>>) attributes {dimension_semantics = [#tpu.dimension_semantics<parallel>], iteration_bounds = array<i64: 2>, scalar_prefetch = 0 : i64, scratch_operands = 0 : i64, tpu.core_type = #tpu.core_type<tc>, window_params = [{transform_indices = @transform_0, window_bounds = array<i64: 24, 24>}, {transform_indices = @transform_1, window_bounds = array<i64: 24, 24>}, {pipeline_mode = #tpu.pipeline_mode<synchronous>, transform_indices = @transform_2, window_bounds = array<i64: 24, 256>}, {pipeline_mode = #tpu.pipeline_mode<synchronous>, transform_indices = @transform_3, window_bounds = array<i64: 24, 256>}, {pipeline_mode = #tpu.pipeline_mode<synchronous>, transform_indices = @transform_4, window_bounds = array<i64: 1, 256>}, {transform_indices = @transform_5, window_bounds = array<i64: 24, 256>}]} {
    %c0 = arith.constant 0 : index
    %c0_0 = arith.constant 0 : index
    %0 = vector.load %arg1[%c0, %c0_0] : memref<24x24xf32, #tpu.memory_space<vmem>>, vector<24x24xf32>
    %c0_1 = arith.constant 0 : index
    %c0_2 = arith.constant 0 : index
    %1 = vector.load %arg3[%c0_1, %c0_2] : memref<24x256xf32, #tpu.memory_space<vmem>>, vector<24x256xf32>
    %cst = arith.constant dense<0.000000e+00> : vector<24x256xf32>
    %2 = tpu.matmul %0, %1, %cst {dimension_numbers = #tpu.dot_dimension_numbers<[1], [0], [0], [1], [0, 0, 1, 1], [], []>} : vector<24x24xf32>, vector<24x256xf32>, vector<24x256xf32> -> vector<24x256xf32>
    %c0_3 = arith.constant 0 : index
    %c0_4 = arith.constant 0 : index
    %3 = vector.load %arg2[%c0_3, %c0_4] : memref<24x24xf32, #tpu.memory_space<vmem>>, vector<24x24xf32>
    %c0_5 = arith.constant 0 : index
    %c0_6 = arith.constant 0 : index
    %4 = vector.load %arg4[%c0_5, %c0_6] : memref<24x256xf32, #tpu.memory_space<vmem>>, vector<24x256xf32>
    %cst_7 = arith.constant dense<0.000000e+00> : vector<24x256xf32>
    %5 = tpu.matmul %3, %4, %cst_7 {dimension_numbers = #tpu.dot_dimension_numbers<[1], [0], [0], [1], [0, 0, 1, 1], [], []>} : vector<24x24xf32>, vector<24x256xf32>, vector<24x256xf32> -> vector<24x256xf32>
    %6 = arith.addf %2, %5 : vector<24x256xf32>
    %c0_8 = arith.constant 0 : index
    %c0_9 = arith.constant 0 : index
    %7 = vector.load %arg5[%c0_8, %c0_9] : memref<1x256xf32, #tpu.memory_space<vmem>>, vector<1x256xf32>
    %8 = vector.broadcast %7 : vector<1x256xf32> to vector<24x256xf32>
    %9 = arith.addf %6, %8 : vector<24x256xf32>
    %c0_10 = arith.constant 0 : index
    %c0_11 = arith.constant 0 : index
    %10 = vector.load %arg6[%c0_10, %c0_11] : memref<24x256xf32, #tpu.memory_space<vmem>>, vector<24x256xf32>
    tpu.vector_store %arg6[%c0_10, %c0_11], %9 {strides = array<i32>} : memref<24x256xf32, #tpu.memory_space<vmem>>, vector<24x256xf32>,
    return
  }
  func.func @transform_0(%arg0: i32) -> (i32, i32) {
    %c0_i32 = arith.constant 0 : i32
    %c0_i32_0 = arith.constant 0 : i32
    return %arg0, %c0_i32 : i32, i32
  }
  func.func @transform_1(%arg0: i32) -> (i32, i32) {
    %c0_i32 = arith.constant 0 : i32
    %c0_i32_0 = arith.constant 0 : i32
    return %arg0, %c0_i32 : i32, i32
  }
  func.func @transform_2(%arg0: i32) -> (i32, i32) {
    %c0_i32 = arith.constant 0 : i32
    %c0_i32_0 = arith.constant 0 : i32
    %c0_i32_1 = arith.constant 0 : i32
    return %c0_i32, %c0_i32_0 : i32, i32
  }
  func.func @transform_3(%arg0: i32) -> (i32, i32) {
    %c0_i32 = arith.constant 0 : i32
    %c0_i32_0 = arith.constant 0 : i32
    %c0_i32_1 = arith.constant 0 : i32
    return %c0_i32, %c0_i32_0 : i32, i32
  }
  func.func @transform_4(%arg0: i32) -> (i32, i32) {
    %c0_i32 = arith.constant 0 : i32
    %c0_i32_0 = arith.constant 0 : i32
    %c0_i32_1 = arith.constant 0 : i32
    return %c0_i32, %c0_i32_0 : i32, i32
  }
  func.func @transform_5(%arg0: i32) -> (i32, i32) {
    %c0_i32 = arith.constant 0 : i32
    %c0_i32_0 = arith.constant 0 : i32
    return %arg0, %c0_i32 : i32, i32
  }
}

</mosaic_0001>

<bundles_post_ra>
// kernel: tpu_custom_call.1
= control target key start
LH: loop header
LB: loop body
LE: loop exit
PB: predicated region body
PF: predicated region fallthrough
CT: control target
= control target key end

     0   :  { %10 = vsyncpa [#allocation3], 0  ;;  %s915_s0 = inlined_call_operand.vmem [shape: f32[40,24], index: 0, kind: input, shape index: {}]   ;;  %s916_s1 = inlined_call_operand.vmem [shape: f32[40,24], index: 1, kind: input, shape index: {}]   ;;  %s917_s2 = inlined_call_operand.vmem [shape: f32[24,256], index: 2, kind: input, shape index: {}]   ;;  %s918_s3 = inlined_call_operand.vmem [shape: f32[24,256], index: 3, kind: input, shape index: {}]   ;;  %s919_s4 = inlined_call_operand.vmem [shape: f32[1,256], index: 4, kind: input, shape index: {}]   ;;  %s920_s5 = inlined_call_operand.hbm [shape: f32[40,256], index: 5, kind: output, shape index: {}]  }
   0x1   :  { %12 = vsyncpa [#allocation3 + $0x1], 0  ;;  %s731_s18 = smov 0   ;;  %s733_s19 = smov 0  }
   0x2   :  { %s735_s20 = smov 0   ;;  %s737_s21 = smov 0  }
   0x3 LB: > { %s752_s22 = sadd.s32 4294967295, %s696_s21   ;;  %s551_s23 = sadd.s32 4294967294, %s696_s21   ;;  %s696_s21 = sphi %s737_s21, %s927_s21   ;;  %s692_s20 = sphi %s735_s20, %s926_s20   ;;  %s688_s19 = sphi %s733_s19, %s925_s19   ;;  %s684_s18 = sphi %s731_s18, %s924_s18  }
   0x4   : > { %s756_s24 = sadd.s32 1, %s696_s21   ;;  %s140_s25 = sadd.s32 1, %s692_s20 }
   0x5   : > { %s137_s26 = ssub.s32 %s696_s21, %s756_s24  ;;  %p150_p0 = scmp.ne.s32.totalorder %s692_s20, %s688_s19 }
   0x6   : > { %p138_p1 = scmp.eq.s32.totalorder %s137_s26, 0  ;;  %p151_p2 = scmp.eq.s32.totalorder %s752_s22, 1 }
   0x7   : > { %p156_p3 = scmp.ne.s32.totalorder %s688_s19, %s684_s18  ;;  %p157_p4 = scmp.eq.s32.totalorder %s551_s23, 1 }
   0x8   : > { %s767_s27 = scalar_select %p138_p1, %s692_s20, %s140_s25  }
   0x9   : > { %p769_p5 = por %p151_p2, %p150_p0  ;;  %p773_p6 = por %p157_p4, %p156_p3 }
   0xa   : > { %p554_p7 = scmp.ge.s32.totalorder %s696_s21, 1  ;;  %p218_p8 = scmp.lt.s32.totalorder %s696_s21, 3 }
   0xc   : > { %p219_p9 = pnand %p554_p7, %p218_p8 }
   0xd   : > { %s789_s11 = smul.u32 (!%p219_p9), 3, %s752_s22  ;;  %s256_s7 = sand.u32 (!%p219_p9), 1, %s688_s19  }
   0xe   : > { %222 = sbr.rel (%p219_p9) target bundleno = 211 (0xd3), region = 40  ;;  %s854_s13 = scalar_lea.sflag (!%p219_p9), [#allocation3], %s256_s7 }
   0xf   : > { %p264_p10 = scmp.lt.s32.totalorder (!%p219_p9), %s789_s11, 4 }
  0x13   : > { %v300_v0 = vld [vmem:[%s917_s2 + $0x20] sm:$0xff]  ;;  %v301_v1 = vld [vmem:[%s917_s2 + $0x28] sm:$0xff]  ;;  %v298_v2 = vld [vmem:[%s917_s2 + $0x10] sm:$0xff]  ;;  %s265_s10 = scalar_select %p264_p10, %s789_s11, 4  ;;  %vm311_vm0 = vcmask 195584  }
  0x14   : > { %395 = vmatpush.msra.mxu2 %v300_v0  ;;  %421 = vmatpush.msra.mxu3 %v301_v1  ;;  %v299_v3 = vld [vmem:[%s917_s2 + $0x18] sm:$0xff]  ;;  %v296_v4 = vld [vmem:[%s917_s2] sm:$0xff]  ;;  %v297_v5 = vld [vmem:[%s917_s2 + $0x8] sm:$0xff]  ;;  %s461_s14 = ssub.s32 (%p769_p5), 5, %s789_s11 }
  0x15   : > { %v309_v6 = vld [vmem:[%s918_s3 + $0x20] sm:$0xff]  ;;  %v310_v7 = vld [vmem:[%s918_s3 + $0x28] sm:$0xff]  ;;  %v307_v8 = vld [vmem:[%s918_s3 + $0x10] sm:$0xff]  ;;  %s555_s16 = sshll.u32 %s265_s10, 3  ;;  %s582_s10 = smul.u32 48, %s256_s7 }
  0x16   : > { %396 = vmatpush.msra.mxu2 %v298_v2  ;;  %422 = vmatpush.msra.mxu3 %v299_v3  ;;  %v308_v9 = vld [vmem:[%s918_s3 + $0x18] sm:$0xff]  ;;  %v305_v10 = vld [vmem:[%s918_s3] sm:$0xff]  ;;  %v306_v11 = vld [vmem:[%s918_s3 + $0x8] sm:$0xff]  ;;  %s267_s25 = scalar_lea.vmem %s915_s0, %s555_s16  ;;  %s281_s6 = scalar_lea.vmem %s916_s1, %s555_s16 }
  0x17   : > { %334 = vmatpush.msra.mxu0 %v309_v6  ;;  %360 = vmatpush.msra.mxu1 %v310_v7  ;;  %v293_v12 = vld [vmem:[%s267_s25] sm:$0xff]  ;;  %v294_v14 = vld [vmem:[%s267_s25 + $0x8] sm:$0xff]  ;;  %v295_v16 = vld [vmem:[%s267_s25 + $0x10] sm:$0xff]  ;;  %s844_s12 = scalar_lea.vmem [#allocation2], %s582_s10  ;;  %p462_p11 = scmp.lt.s32.totalorder (%p769_p5), %s461_s14, 3 }
  0x18   : > { %397 = vmatpush.msra.mxu2 %v296_v4  ;;  %423 = vmatpush.msra.mxu3 %v297_v5  ;;  %v302_v13 = vld [vmem:[%s281_s6] sm:$0xff]  ;;  %v303_v15 = vld [vmem:[%s281_s6 + $0x8] sm:$0xff]  ;;  %v304_v17 = vld [vmem:[%s281_s6 + $0x10] sm:$0xff] }
  0x19   : > { %335 = vmatpush.msra.mxu0 %v307_v8  ;;  %361 = vmatpush.msra.mxu1 %v308_v9  ;;  %v434_v20 = vld [vmem:[%s919_s4] sm:$0x3] }
  0x1a   : > { %563 = vmatmul.msk.f32.vlgmr.msra.gmra.mxu2 %vm311_vm0, %v293_v12  ;;  %566 = vmatmul.msk.f32.vlgmr.msra.gmra.mxu3 %vm311_vm0, %v293_v12  ;;  %v436_v21 = vperm.slane %v434_v20, 0  ;;  %v437_v22 = vperm.slane %v434_v20, 1 }
  0x1b   : > { %336 = vmatpush.msra.mxu0 %v305_v10  ;;  %362 = vmatpush.msra.mxu1 %v306_v11 }
  0x1c   : > { %557 = vmatmul.msk.f32.vlgmr.msra.gmra.mxu0 %vm311_vm0, %v302_v13  ;;  %560 = vmatmul.msk.f32.vlgmr.msra.gmra.mxu1 %vm311_vm0, %v302_v13 }
  0x22   : > { %564 = vmatmul.msk.f32.gmra.mxu2 %vm311_vm0, %v294_v14  ;;  %567 = vmatmul.msk.f32.gmra.mxu3 %vm311_vm0, %v294_v14 }
  0x24   : > { %558 = vmatmul.msk.f32.gmra.mxu0 %vm311_vm0, %v303_v15  ;;  %561 = vmatmul.msk.f32.gmra.mxu1 %vm311_vm0, %v303_v15 }
  0x2a   : > { %565 = vmatmul.msk.f32.gmra.mxu2 %vm311_vm0, %v295_v16  ;;  %568 = vmatmul.msk.f32.gmra.mxu3 %vm311_vm0, %v295_v16 }
  0x2c   : > { %559 = vmatmul.msk.f32.gmra.mxu0 %vm311_vm0, %v304_v17  ;;  %562 = vmatmul.msk.f32.gmra.mxu1 %vm311_vm0, %v304_v17 }
  0x99   : > { %v338_v18 = vpop.f32.mrf.mxu0  ;;  %v364_v19 = vpop.f32.mrf.mxu1 }
  0x9d   : > { %v399_v23 = vpop.f32.mrf.mxu2  ;;  %v425_v24 = vpop.f32.mrf.mxu3 }
  0x9e   : > { %v400_v25 = vadd.f32 %v399_v23, %v338_v18  ;;  %v426_v26 = vadd.f32 %v425_v24, %v364_v19 }
  0xa0   : > { %v440_v27 = vadd.f32 %v436_v21, %v400_v25  ;;  %v441_v28 = vadd.f32 %v437_v22, %v426_v26 }
  0xa1   : > { %v341_v29 = vpop.f32.mrf.mxu0  ;;  %v367_v30 = vpop.f32.mrf.mxu1 }
  0xa2   : > { %446 = vst [vmem:[%s844_s12] sm:$0xff] %v440_v27 }
  0xa3   : > { %447 = vst [vmem:[%s844_s12 + $0x8] sm:$0xff] %v441_v28 }
  0xa5   : > { %v402_v31 = vpop.f32.mrf.mxu2  ;;  %v428_v32 = vpop.f32.mrf.mxu3 }
  0xa6   : > { %v403_v33 = vadd.f32 %v402_v31, %v341_v29  ;;  %v429_v34 = vadd.f32 %v428_v32, %v367_v30 }
  0xa8   : > { %v442_v35 = vadd.f32 %v436_v21, %v403_v33  ;;  %v443_v36 = vadd.f32 %v437_v22, %v429_v34 }
  0xa9   : > { %v344_v37 = vpop.f32.mrf.mxu0  ;;  %v370_v38 = vpop.f32.mrf.mxu1 }
  0xaa   : > { %448 = vst [vmem:[%s844_s12 + $0x10] sm:$0xff] %v442_v35 }
  0xab   : > { %449 = vst [vmem:[%s844_s12 + $0x18] sm:$0xff] %v443_v36 }
  0xad   : > { %v405_v39 = vpop.f32.mrf.mxu2  ;;  %v431_v40 = vpop.f32.mrf.mxu3 }
  0xae   : > { %v406_v41 = vadd.f32 %v405_v39, %v344_v37  ;;  %v432_v42 = vadd.f32 %v431_v40, %v370_v38 }
  0xaf   : > { %459 = sbr.rel (!%p769_p5) target bundleno = 211 (0xd3), region = 44 }
  0xb0   : > { %v444_v43 = vadd.f32 %v436_v21, %v406_v41  ;;  %v445_v44 = vadd.f32 %v437_v22, %v432_v42 }
  0xb2   : > { %450 = vst [vmem:[%s844_s12 + $0x20] sm:$0xff] %v444_v43 }
  0xb3   : > { %451 = vst [vmem:[%s844_s12 + $0x28] sm:$0xff] %v445_v44 }
  0xb4   : > { %s929_s14 = smov (!%p462_p11, %s461_s14), 3 }
  0xb5   : > { %s578_s15 = sshll.u32 %s929_s14, 4 }
  0xb6   : > { %s466_s16 = ssub.s32 48, %s578_s15 }
  0xb7   : > { %s467_s17 = sshll.u32 %s466_s16, 4 }
  0xb8   : > { %468 = vsyncadd %s854_s13, %s467_s17  ;;  %p863_p12 = scmp.ne.s32.totalorder %s578_s15, 0  ;;  %s581_s28 = smul.u32 48, %s752_s22 }
  0xb9   : > { %s474_s25 = sshll.u32 %s844_s12, 4  ;;  %s575_s11 = sshll.u32 %s929_s14, 8  ;;  %s873_s25 = int_to_ptr.vmem [resolvable:$true] %s474_s25 }
  0xba   : > { %s472_s6 = scalar_lea.hbm %s920_s5, %s581_s28  ;;  %s623_s8 = sshra.s32 %s873_s25, 4  ;;  %s624_s8 = int_to_ptr.vmem [resolvable:$true] %s623_s8 }
  0xbb   : > { %s476_s7 = sshll.u32 %s472_s6, 4  ;;  %s625_s9 = sshrl.u32 %s575_s11, 4  ;;  %s875_s7 = int_to_ptr.hbm [resolvable:$true] %s476_s7 }
  0xbc   : > { %s630_s10 = scalar_lea.vmem %s624_s8, %s625_s9  ;;  %s698_s22 = smov [#allocation2]  }
  0xbd   : > { %p631_p13 = scmp.ne.s32.totalorder %s624_s8, %s630_s10  ;;  %s634_s12 = scalar_lea.vmem %s698_s22, 96 }
  0xbe   : > { %p636_p2 = scmp.lt.s32.totalorder %s634_s12, %s630_s10 }
  0xbf   : > { %p632_p0 = pnand %p631_p13, %p863_p12 }
  0xc1   : > { %p633_p1 = pneg %p632_p0 }
  0xc3   : > { %p638_p3 = pnand %p636_p2, %p633_p1 }
  0xc5   : > { %641 = shalt.err (!%p638_p3)
}
  0xc6   : > { %s642_s15 = sshra.s32 %s875_s7, 4  ;;  %s653_s26 = scalar_lea.hbm %s920_s5, 80  ;;  %s643_s15 = int_to_ptr.hbm [resolvable:$true] %s642_s15 }
  0xc7   : > { %s649_s16 = scalar_lea.hbm %s643_s15, %s625_s9  ;;  %p654_p8 = scmp.lt.s32.totalorder %s643_s15, %s920_s5 }
  0xc8   : > { %p650_p4 = scmp.ne.s32.totalorder %s643_s15, %s649_s16  ;;  %p655_p9 = scmp.lt.s32.totalorder %s653_s26, %s649_s16 }
  0xca   : > { %p651_p5 = pnand %p650_p4, %p863_p12  ;;  %p656_p10 = por %p655_p9, %p654_p8 }
  0xcc   : > { %p652_p7 = pneg %p651_p5 }
  0xce   : > { %p657_p11 = pnand %p656_p10, %p652_p7 }
  0xd0   : > { %660 = shalt.err (!%p657_p11)
}
  0xd1   : > { %s699_s8 = smov 256   ;;  %s700_s9 = smov 16  }
  0xd2   : > { %482 = dma.vmem_to_hbm [thread:$0]  (%p863_p12), %s873_s25, %s575_s11, %s875_s7, %s854_s13, %s699_s8, %s699_s8, %s700_s9  }
  0xd3 PF: > { %p588_p13 = scmp.ge.s32.totalorder %s696_s21, 2  ;;  %s491_s10 = sand.u32 1, %s684_s18  }
  0xd4   : > { %s492_s22 = scalar_lea.sflag [#allocation3], %s491_s10 }
  0xd5   : > { %p585_p0 = pnand %p588_p13, %p773_p6 }
  0xd7   : > { %p586_p1 = pneg %p585_p0 }
  0xd9   : > { %679 = dma.done.wait (%p586_p1), %s492_s22, 768  }
  0xda   : > { %681 = vsyncadd (%p586_p1), %s492_s22, 4294966528  ;;  %p15_p2 = scmp.ge.s32.totalorder %s756_s24, 4   ;;  %s924_s18 = smov %s688_s19 }
  0xdb   : > { %s925_s19 = smov %s692_s20  ;;  %s926_s20 = smov %s767_s27 }
  0xdc   : > { %s927_s21 = smov %s756_s24  ;;  %17 = sbr.rel (!%p15_p2) target bundleno = 3 (0x3), region = 78 }
  0xe1   :  { %498 = vsyncpa [#allocation3], 1 }
  0xe2   :  { %500 = vsyncpa [#allocation3 + $0x1], 1 }

</bundles_post_ra>
